<compile_context>
chip_gen: v6e
topology: v6e:2x2x1
jax: 0.10.0
libtpu: 0.0.40
codegen_flags: <defaults>
</compile_context>

<pallas_src>
import functools

import jax
import jax.numpy as jnp
from jax.experimental import pallas as pl
from jax.experimental.pallas import tpu as pltpu

# Synthetic constants (the original script defines these globally).
JAMMER_PPO_NETWORK_INPUT_SIZE = 32   # input_size
NUM_SEEDS = 8                        # output_size
HIDDEN1 = 128
HIDDEN2 = 64
OUT_PAD = 128                        # fc3 matmul N padded to 128 lanes (VMEM only)


def _round_up(n, m):
    return (n + m - 1) // m * m


def _mlp_kernel(x_ref, w1_ref, b1_ref, w2_ref, b2_ref, w3_ref, b3_ref, o_ref):
    # fc1 + ReLU   (dropout1 is identity at inference)
    h1 = jnp.dot(x_ref[...], w1_ref[...], preferred_element_type=jnp.float32)
    h1 = jnp.maximum(h1 + b1_ref[...], 0.0)
    # fc2 + ReLU   (dropout2 is identity at inference)
    h2 = jnp.dot(h1.astype(w2_ref.dtype), w2_ref[...],
                 preferred_element_type=jnp.float32)
    h2 = jnp.maximum(h2 + b2_ref[...], 0.0)
    # fc3: padded (64,128) weight keeps a full 128-lane MXU N; only the first
    # NUM_SEEDS lanes are stored so the HBM writeback stays narrow.
    out = jnp.dot(h2.astype(w3_ref.dtype), w3_ref[...],
                  preferred_element_type=jnp.float32)
    out = out + b3_ref[...]
    o_ref[...] = out[:, :NUM_SEEDS].astype(o_ref.dtype)


@functools.partial(jax.jit, static_argnames=("block_rows", "compute_dtype"))
def jammer_ppo_genie_actor_forward(x, params, *, block_rows=8192,
                                   compute_dtype=jnp.bfloat16):
    """Fused MLP forward. x: (B, IN). Returns (B, NUM_SEEDS) f32.

    compute_dtype controls the MXU operand precision for x / weights only;
    accumulation, biases and ReLU stay f32.  Pass jnp.float32 for an exact
    match of the f32 PyTorch reference (bf16 default is ~1e-2 rel. error).
    """
    w1, b1, w2, b2, w3, b3 = params
    B, IN = x.shape
    assert IN == JAMMER_PPO_NETWORK_INPUT_SIZE
    assert B >= 1

    # fc3 zero-padded to 128 output lanes for the matmul (tiny, VMEM-resident).
    w3p = jnp.zeros((HIDDEN2, OUT_PAD), jnp.float32).at[:, :NUM_SEEDS].set(w3)
    b3p = jnp.zeros((1, OUT_PAD), jnp.float32).at[:, :NUM_SEEDS].set(b3)

    # MXU operands in compute_dtype; biases stay f32.
    xc = x.astype(compute_dtype)
    w1c = w1.astype(compute_dtype)
    w2c = w2.astype(compute_dtype)
    w3c = w3p.astype(compute_dtype)

    # Batch tile: multiple of 8 (or exactly B for tiny batches -- full-extent
    # block is always legal).  For B <= block_rows, aim for >=2 grid steps so
    # v7x's two TensorCores can each take a slice of the batch axis.  No jnp.pad:
    # the last block may be ragged; Pallas masks its out-of-bounds writes.
    if B <= block_rows:
        half = _round_up(pl.cdiv(B, 2), 8)
        tb = half if half < B else B
    else:
        tb = _round_up(block_rows, 8)
    grid = (pl.cdiv(B, tb),)

    const = lambda i: (0, 0)   # weights/biases: same block every step (VMEM-resident)

    n_rows = grid[0] * tb
    flops = 2 * n_rows * (IN * HIDDEN1 + HIDDEN1 * HIDDEN2 + HIDDEN2 * OUT_PAD)
    bytes_accessed = (
        xc.size * xc.dtype.itemsize                      # input stream
        + B * NUM_SEEDS * 4                              # narrowed output stream
        + w1c.size * w1c.dtype.itemsize
        + w2c.size * w2c.dtype.itemsize
        + w3c.size * w3c.dtype.itemsize
        + (b1.size + b2.size + b3p.size) * 4
    )

    out = pl.pallas_call(
        _mlp_kernel,
        out_shape=jax.ShapeDtypeStruct((B, NUM_SEEDS), jnp.float32),
        grid=grid,
        in_specs=[
            pl.BlockSpec((tb, IN), lambda i: (i, 0)),        # x tile (pipelined)
            pl.BlockSpec((IN, HIDDEN1), const),              # w1 (resident)
            pl.BlockSpec((1, HIDDEN1), const),               # b1
            pl.BlockSpec((HIDDEN1, HIDDEN2), const),         # w2
            pl.BlockSpec((1, HIDDEN2), const),               # b2
            pl.BlockSpec((HIDDEN2, OUT_PAD), const),         # w3 (lane-padded)
            pl.BlockSpec((1, OUT_PAD), const),               # b3 (lane-padded)
        ],
        out_specs=pl.BlockSpec((tb, NUM_SEEDS), lambda i: (i, 0)),
        compiler_params=pltpu.CompilerParams(
            dimension_semantics=("parallel",)),
        cost_estimate=pl.CostEstimate(
            flops=flops, transcendentals=0, bytes_accessed=bytes_accessed),
    )(xc, w1c, b1, w2c, b2, w3c, b3p)

    return out


def init_params(key):
    """Deterministic parameter init (shapes match the nn.Linear layers)."""
    k1, k2, k3, k4, k5, k6 = jax.random.split(key, 6)

    def linear_init(kw, kb, fan_in, fan_out):
        bound = 1.0 / jnp.sqrt(fan_in)
        w = jax.random.uniform(kw, (fan_in, fan_out), jnp.float32, -bound, bound)
        b = jax.random.uniform(kb, (1, fan_out), jnp.float32, -bound, bound)
        return w, b

    w1, b1 = linear_init(k1, k2, JAMMER_PPO_NETWORK_INPUT_SIZE, HIDDEN1)
    w2, b2 = linear_init(k3, k4, HIDDEN1, HIDDEN2)
    w3, b3 = linear_init(k5, k6, HIDDEN2, NUM_SEEDS)
    return (w1, b1, w2, b2, w3, b3)


def reference_forward(x, params):
    """Plain-JAX reference for correctness check."""
    w1, b1, w2, b2, w3, b3 = params
    h = jnp.maximum(x @ w1 + b1, 0.0)
    h = jnp.maximum(h @ w2 + b2, 0.0)
    return h @ w3 + b3


if __name__ == "__main__":
    key = jax.random.PRNGKey(0)
    kp, kx, kx2 = jax.random.split(key, 3)
    params = init_params(kp)

    # TODO(synk): training-mode dropout (p=0.3) not implemented; forward
    # matches module.eval() semantics (dropout == identity).

    # Small-batch check (single full-extent block).
    B = 2
    x = jax.random.normal(kx, (B, JAMMER_PPO_NETWORK_INPUT_SIZE), jnp.float32)
    ref = reference_forward(x, params)

    out = jax.block_until_ready(jammer_ppo_genie_actor_forward(x, params))  # bf16 default
    assert out.shape == (B, NUM_SEEDS)
    assert jnp.allclose(out, ref, atol=1e-1, rtol=1e-1)

    out_f32 = jax.block_until_ready(
        jammer_ppo_genie_actor_forward(x, params, compute_dtype=jnp.float32))
    assert jnp.allclose(out_f32, ref, atol=1e-4, rtol=1e-4)

    # Multi-step grid with ragged (masked) last block.
    B2 = 300
    x2 = jax.random.normal(kx2, (B2, JAMMER_PPO_NETWORK_INPUT_SIZE), jnp.float32)
    ref2 = reference_forward(x2, params)
    out2 = jax.block_until_ready(
        jammer_ppo_genie_actor_forward(x2, params, compute_dtype=jnp.float32))
    assert out2.shape == (B2, NUM_SEEDS)
    assert jnp.allclose(out2, ref2, atol=1e-4, rtol=1e-4)

    print("KERNEL_OK")
</pallas_src>

<mosaic_0001>
module attributes {stable_mosaic.version = 11 : i64} {
  func.func @_mlp_kernel(%arg0: i32, %arg1: memref<2x32xbf16, #tpu.memory_space<vmem>>, %arg2: memref<32x128xbf16, #tpu.memory_space<vmem>>, %arg3: memref<1x128xf32, #tpu.memory_space<vmem>>, %arg4: memref<128x64xbf16, #tpu.memory_space<vmem>>, %arg5: memref<1x64xf32, #tpu.memory_space<vmem>>, %arg6: memref<64x128xbf16, #tpu.memory_space<vmem>>, %arg7: memref<1x128xf32, #tpu.memory_space<vmem>>, %arg8: memref<2x8xf32, #tpu.memory_space<vmem>>) attributes {dimension_semantics = [#tpu.dimension_semantics<parallel>], iteration_bounds = array<i64: 1>, scalar_prefetch = 0 : i64, scratch_operands = 0 : i64, tpu.core_type = #tpu.core_type<tc>, window_params = [{transform_indices = @transform_0, window_bounds = array<i64: 2, 32>}, {pipeline_mode = #tpu.pipeline_mode<synchronous>, transform_indices = @transform_1, window_bounds = array<i64: 32, 128>}, {pipeline_mode = #tpu.pipeline_mode<synchronous>, transform_indices = @transform_2, window_bounds = array<i64: 1, 128>}, {pipeline_mode = #tpu.pipeline_mode<synchronous>, transform_indices = @transform_3, window_bounds = array<i64: 128, 64>}, {pipeline_mode = #tpu.pipeline_mode<synchronous>, transform_indices = @transform_4, window_bounds = array<i64: 1, 64>}, {pipeline_mode = #tpu.pipeline_mode<synchronous>, transform_indices = @transform_5, window_bounds = array<i64: 64, 128>}, {pipeline_mode = #tpu.pipeline_mode<synchronous>, transform_indices = @transform_6, window_bounds = array<i64: 1, 128>}, {transform_indices = @transform_7, window_bounds = array<i64: 2, 8>}]} {
    %c0 = arith.constant 0 : index
    %c0_0 = arith.constant 0 : index
    %0 = vector.load %arg1[%c0, %c0_0] : memref<2x32xbf16, #tpu.memory_space<vmem>>, vector<2x32xbf16>
    %c0_1 = arith.constant 0 : index
    %c0_2 = arith.constant 0 : index
    %1 = vector.load %arg2[%c0_1, %c0_2] : memref<32x128xbf16, #tpu.memory_space<vmem>>, vector<32x128xbf16>
    %cst = arith.constant dense<0.000000e+00> : vector<2x128xf32>
    %2 = tpu.matmul %0, %1, %cst {dimension_numbers = #tpu.dot_dimension_numbers<[1], [0], [0], [1], [0, 0, 1, 1], [], []>} : vector<2x32xbf16>, vector<32x128xbf16>, vector<2x128xf32> -> vector<2x128xf32>
    %c0_3 = arith.constant 0 : index
    %c0_4 = arith.constant 0 : index
    %3 = vector.load %arg3[%c0_3, %c0_4] : memref<1x128xf32, #tpu.memory_space<vmem>>, vector<1x128xf32>
    %4 = vector.broadcast %3 : vector<1x128xf32> to vector<2x128xf32>
    %5 = arith.addf %2, %4 : vector<2x128xf32>
    %cst_5 = arith.constant 0.000000e+00 : f32
    %6 = vector.broadcast %cst_5 : f32 to vector<2x128xf32>
    %7 = arith.maximumf %5, %6 : vector<2x128xf32>
    %8 = arith.truncf %7 : vector<2x128xf32> to vector<2x128xbf16>
    %c0_6 = arith.constant 0 : index
    %c0_7 = arith.constant 0 : index
    %9 = vector.load %arg4[%c0_6, %c0_7] : memref<128x64xbf16, #tpu.memory_space<vmem>>, vector<128x64xbf16>
    %cst_8 = arith.constant dense<0.000000e+00> : vector<2x64xf32>
    %10 = tpu.matmul %8, %9, %cst_8 {dimension_numbers = #tpu.dot_dimension_numbers<[1], [0], [0], [1], [0, 0, 1, 1], [], []>} : vector<2x128xbf16>, vector<128x64xbf16>, vector<2x64xf32> -> vector<2x64xf32>
    %c0_9 = arith.constant 0 : index
    %c0_10 = arith.constant 0 : index
    %11 = vector.load %arg5[%c0_9, %c0_10] : memref<1x64xf32, #tpu.memory_space<vmem>>, vector<1x64xf32>
    %12 = vector.broadcast %11 : vector<1x64xf32> to vector<2x64xf32>
    %13 = arith.addf %10, %12 : vector<2x64xf32>
    %cst_11 = arith.constant 0.000000e+00 : f32
    %14 = vector.broadcast %cst_11 : f32 to vector<2x64xf32>
    %15 = arith.maximumf %13, %14 : vector<2x64xf32>
    %16 = arith.truncf %15 : vector<2x64xf32> to vector<2x64xbf16>
    %c0_12 = arith.constant 0 : index
    %c0_13 = arith.constant 0 : index
    %17 = vector.load %arg6[%c0_12, %c0_13] : memref<64x128xbf16, #tpu.memory_space<vmem>>, vector<64x128xbf16>
    %cst_14 = arith.constant dense<0.000000e+00> : vector<2x128xf32>
    %18 = tpu.matmul %16, %17, %cst_14 {dimension_numbers = #tpu.dot_dimension_numbers<[1], [0], [0], [1], [0, 0, 1, 1], [], []>} : vector<2x64xbf16>, vector<64x128xbf16>, vector<2x128xf32> -> vector<2x128xf32>
    %c0_15 = arith.constant 0 : index
    %c0_16 = arith.constant 0 : index
    %19 = vector.load %arg7[%c0_15, %c0_16] : memref<1x128xf32, #tpu.memory_space<vmem>>, vector<1x128xf32>
    %20 = vector.broadcast %19 : vector<1x128xf32> to vector<2x128xf32>
    %21 = arith.addf %18, %20 : vector<2x128xf32>
    %22 = vector.extract_strided_slice %21 {offsets = [0, 0], sizes = [2, 8], strides = [1, 1]} : vector<2x128xf32> to vector<2x8xf32>
    %c0_17 = arith.constant 0 : index
    %c0_18 = arith.constant 0 : index
    %23 = vector.load %arg8[%c0_17, %c0_18] : memref<2x8xf32, #tpu.memory_space<vmem>>, vector<2x8xf32>
    tpu.vector_store %arg8[%c0_17, %c0_18], %22 {strides = array<i32>} : memref<2x8xf32, #tpu.memory_space<vmem>>, vector<2x8xf32>,
    return
  }
  func.func @transform_0(%arg0: i32) -> (i32, i32) {
    %c0_i32 = arith.constant 0 : i32
    %c0_i32_0 = arith.constant 0 : i32
    return %arg0, %c0_i32 : i32, i32
  }
  func.func @transform_1(%arg0: i32) -> (i32, i32) {
    %c0_i32 = arith.constant 0 : i32
    %c0_i32_0 = arith.constant 0 : i32
    %c0_i32_1 = arith.constant 0 : i32
    return %c0_i32, %c0_i32_0 : i32, i32
  }
  func.func @transform_2(%arg0: i32) -> (i32, i32) {
    %c0_i32 = arith.constant 0 : i32
    %c0_i32_0 = arith.constant 0 : i32
    %c0_i32_1 = arith.constant 0 : i32
    return %c0_i32, %c0_i32_0 : i32, i32
  }
  func.func @transform_3(%arg0: i32) -> (i32, i32) {
    %c0_i32 = arith.constant 0 : i32
    %c0_i32_0 = arith.constant 0 : i32
    %c0_i32_1 = arith.constant 0 : i32
    return %c0_i32, %c0_i32_0 : i32, i32
  }
  func.func @transform_4(%arg0: i32) -> (i32, i32) {
    %c0_i32 = arith.constant 0 : i32
    %c0_i32_0 = arith.constant 0 : i32
    %c0_i32_1 = arith.constant 0 : i32
    return %c0_i32, %c0_i32_0 : i32, i32
  }
  func.func @transform_5(%arg0: i32) -> (i32, i32) {
    %c0_i32 = arith.constant 0 : i32
    %c0_i32_0 = arith.constant 0 : i32
    %c0_i32_1 = arith.constant 0 : i32
    return %c0_i32, %c0_i32_0 : i32, i32
  }
  func.func @transform_6(%arg0: i32) -> (i32, i32) {
    %c0_i32 = arith.constant 0 : i32
    %c0_i32_0 = arith.constant 0 : i32
    %c0_i32_1 = arith.constant 0 : i32
    return %c0_i32, %c0_i32_0 : i32, i32
  }
  func.func @transform_7(%arg0: i32) -> (i32, i32) {
    %c0_i32 = arith.constant 0 : i32
    %c0_i32_0 = arith.constant 0 : i32
    return %arg0, %c0_i32 : i32, i32
  }
}

</mosaic_0001>

<bundles_post_ra>
// kernel: jammer_ppo_genie_actor_forward.1
= control target key start
LH: loop header
LB: loop body
LE: loop exit
PB: predicated region body
PF: predicated region fallthrough
CT: control target
= control target key end

     0   :  { %v425_v1 = vmov 0.0   ;;  %vm426_vm0 = vmmov 0   ;;  %vm52_vm1 = vcmask 261120   ;;  %s528_s0 = inlined_call_operand.vmem [shape: bf16[2,32], index: 0, kind: input, shape index: {}]   ;;  %s529_s1 = inlined_call_operand.vmem [shape: bf16[32,128], index: 1, kind: input, shape index: {}]   ;;  %s530_s2 = inlined_call_operand.vmem [shape: f32[1,128], index: 2, kind: input, shape index: {}]   ;;  %s531_s3 = inlined_call_operand.vmem [shape: bf16[128,64], index: 3, kind: input, shape index: {}]   ;;  %s532_s4 = inlined_call_operand.vmem [shape: f32[1,64], index: 4, kind: input, shape index: {}]   ;;  %s533_s5 = inlined_call_operand.vmem [shape: bf16[64,128], index: 5, kind: input, shape index: {}]   ;;  %s534_s6 = inlined_call_operand.vmem [shape: f32[1,128], index: 6, kind: input, shape index: {}]   ;;  %s535_s7 = inlined_call_operand.hbm [shape: f32[2,8], index: 7, kind: output, shape index: {}]  }
   0x1   :  { %v389_v0 = vld [vmem:[%s529_s1 + $0x8] sm:$0xff]   ;;  %346 = vmatprep.subr.bf16.mxu0 %v425_v1  ;;  %354 = vmatprep.subr.bf16.mxu1 %v425_v1  ;;  %v390_v2 = vld [vmem:[%s529_s1] sm:$0xff]   ;;  %v391_v3 = vld [vmem:[%s531_s3 + $0x38] sm:$0xff]  }
   0x2   :  { %347 = vmatpush3.bf16.msra.mxu0 %v389_v0  ;;  %350 = vmatprep.mubr.msk.bf16.mxu0 %vm426_vm0, %v425_v1  ;;  %v392_v4 = vld [vmem:[%s531_s3 + $0x30] sm:$0xff]   ;;  %v28_v5 = vld [vmem:[%s528_s0] sm:$0x1]  ;;  %v393_v6 = vld [vmem:[%s531_s3 + $0x28] sm:$0xff]  }
   0x3   :  { %348 = vmatprep.subr.bf16.mxu0 %v425_v1  ;;  %370 = vmatprep.mubr.msk.bf16.mxu1 %vm426_vm0, %v425_v1  ;;  %v394_v7 = vld [vmem:[%s531_s3 + $0x20] sm:$0xff]  }
   0x4   :  { %355 = vmatpush3.bf16.msra.mxu1 %v391_v3 }
   0x5   :  { %356 = vmatprep.subr.bf16.mxu1 %v425_v1 }
   0x6   :  { %349 = vmatpush3.bf16.msra.mxu0 %v390_v2 }
   0x7   :  { %374 = vmatprep.subr.bf16.mxu0 %v425_v1 }
   0x8   :  { %357 = vmatpush3.bf16.msra.mxu1 %v392_v4 }
   0x9   :  { %351 = vmatmul.mubr.msk.bf16.vlgmr.msra.gmra.mxu0 %vm52_vm1, %v28_v5  ;;  %358 = vmatprep.subr.bf16.mxu1 %v425_v1 }
   0xa   :  { %382 = vmatprep.mubr.msk.bf16.mxu0 %vm426_vm0, %v425_v1 }
   0xc   :  { %359 = vmatpush3.bf16.msra.mxu1 %v393_v6 }
   0xd   :  { %12 = vsyncpa [#allocation3], 0  ;;  %360 = vmatprep.subr.bf16.mxu1 %v425_v1  ;;  %v395_v8 = vld [vmem:[%s531_s3 + $0x18] sm:$0xff]   ;;  %v396_v9 = vld [vmem:[%s531_s3 + $0x10] sm:$0xff]   ;;  %vm250_vm2 = vcmask 523264   ;;  %s427_s10 = smov [#allocation2]  }
   0xe   :  { %v397_v10 = vld [vmem:[%s531_s3 + $0x8] sm:$0xff]   ;;  %v398_v11 = vld [vmem:[%s531_s3] sm:$0xff]   ;;  %v399_v12 = vld [vmem:[%s533_s5 + $0x18] sm:$0xff]   ;;  %vm294_vm3 = vcmask 58368  }
   0xf   :  { %375 = vmatpush3.bf16.msra.mxu0 %v399_v12  ;;  %v400_v13 = vld [vmem:[%s533_s5 + $0x10] sm:$0xff]   ;;  %v310_v14 = vld [vmem:[%s530_s2] ss:$0 sm:$0xff]  ;;  %v401_v22 = vld [vmem:[%s533_s5 + $0x8] sm:$0xff]  }
  0x10   :  { %361 = vmatpush3.bf16.msra.mxu1 %v394_v7  ;;  %376 = vmatprep.subr.bf16.mxu0 %v425_v1  ;;  %v402_v23 = vld [vmem:[%s533_s5] sm:$0xff]   ;;  %s302_s5 = sshll.u32 %s427_s10, 4  ;;  %s303_s5 = int_to_ptr.vmem [resolvable:$true] %s302_s5 }
  0x11   :  { %362 = vmatprep.subr.bf16.mxu1 %v425_v1  ;;  %v314_v24 = vld [vmem:[%s532_s4] ss:$0 sm:$0xff]  ;;  %s403_s4 = scalar_lea.vmem %s303_s5, 32  ;;  %p408_p1 = scmp.lt.s32.totalorder %s303_s5, %s303_s5 }
  0x12   :  { %v323_v32 = vld [vmem:[%s534_s6] ss:$0 sm:$0xff]  ;;  %p404_p0 = scmp.ne.s32.totalorder %s303_s5, %s403_s4  ;;  %p409_p2 = scmp.lt.s32.totalorder %s403_s4, %s403_s4 }
  0x13   :  { %377 = vmatpush3.bf16.msra.mxu0 %v400_v13 }
  0x14   :  { %363 = vmatpush3.bf16.msra.mxu1 %v395_v8  ;;  %378 = vmatprep.subr.bf16.mxu0 %v425_v1  ;;  %p410_p3 = por %p409_p2, %p408_p1 }
  0x15   :  { %364 = vmatprep.subr.bf16.mxu1 %v425_v1 }
  0x16   :  { %p411_p4 = pnand %p410_p3, %p404_p0 }
  0x17   :  { %379 = vmatpush3.bf16.msra.mxu0 %v401_v22 }
  0x18   :  { %365 = vmatpush3.bf16.msra.mxu1 %v396_v9  ;;  %380 = vmatprep.subr.bf16.mxu0 %v425_v1 }
  0x19   :  { %366 = vmatprep.subr.bf16.mxu1 %v425_v1 }
  0x1b   :  { %381 = vmatpush3.bf16.msra.mxu0 %v402_v23 }
  0x1c   :  { %367 = vmatpush3.bf16.msra.mxu1 %v397_v10 }
  0x1d   :  { %368 = vmatprep.subr.bf16.mxu1 %v425_v1 }
  0x20   :  { %369 = vmatpush3.bf16.msra.mxu1 %v398_v11 }
  0xc9   :  { %v90_v15 = vpop.f32.mrf.mxu0 }
  0xca   :  { %v91_v16 = vadd.f32 %v310_v14, %v90_v15 }
  0xcb   :  { %v352_v17 = vpop.f32.mrf.mxu0 }
  0xcc   :  { %v96_v18 = vmax.f32 %v91_v16, 0.0 }
  0xcd   :  { %v93_v19 = vpop.f32.mrf.mxu0 }
  0xce   :  { %v97_v20 = vpack.c.bf16 %v96_v18, %v96_v18 }
  0xcf   :  { %v353_v21 = vpop.f32.mrf.mxu0 }
  0xd0   :  { %371 = vmatmul.mubr.bf16.vlgmr.msra.gmra.mxu1 %v97_v20 }
 0x190   :  { %v203_v25 = vpop.f32.mrf.mxu1 }
 0x191   :  { %v204_v26 = vadd.f32 %v314_v24, %v203_v25 }
 0x192   :  { %v372_v27 = vpop.f32.mrf.mxu1 }
 0x193   :  { %v209_v28 = vmax.f32 %v204_v26, 0.0 }
 0x194   :  { %v206_v29 = vpop.f32.mrf.mxu1 }
 0x195   :  { %v210_v30 = vpack.c.bf16 %v209_v28, %v209_v28 }
 0x196   :  { %v373_v31 = vpop.f32.mrf.mxu1 }
 0x197   :  { %383 = vmatmul.mubr.msk.bf16.vlgmr.msra.gmra.mxu0 %vm250_vm2, %v210_v30 }
 0x257   :  { %v288_v33 = vpop.f32.mrf.mxu0 }
 0x258   :  { %v289_v34 = vadd.f32 %v323_v32, %v288_v33 }
 0x259   :  { %v384_v35 = vpop.f32.mrf.mxu0 }
 0x25a   :  { %295 = vst.msk [vmem:[#allocation2] sm:$0x3] %vm294_vm3, %v289_v34 }
 0x25b   :  { %v291_v36 = vpop.f32.mrf.mxu0 }
 0x25c   :  { %414 = shalt.err (!%p411_p4)
}
 0x25d   :  { %305 = dma.vmem_to_hbm [thread:$0]  %s303_s5, 32, %s535_s7, [#allocation3]   ;;  %v385_v37 = vpop.f32.mrf.mxu0 }
 0x25e   :  { %423 = dma.done.wait [#allocation3], 32  }
 0x25f   :  { %424 = vsyncadd [#allocation3], 4294967264 }
 0x260   :  { %309 = vsyncpa [#allocation3], 1 }

</bundles_post_ra>
